<compile_context>
chip_gen: v7x
topology: tpu7x:2x2x1
jax: 0.10.0
libtpu: 0.0.40
codegen_flags: <defaults>
</compile_context>

<pallas_src>
import jax
import jax.numpy as jnp
from jax.experimental import pallas as pl
from jax.experimental.pallas import tpu as pltpu

LN_EPS = 1e-5  # torch.nn.LayerNorm default


def _self_output_kernel(h_ref, x_ref, w_ref, b_ref, g_ref, beta_ref, o_ref,
                        acc_ref):
    # Grid: (row_tiles, k_tiles); K (input-feature reduction) axis is last.
    k = pl.program_id(1)

    @pl.when(k == 0)
    def _():
        acc_ref[...] = jnp.zeros_like(acc_ref)

    # Dense matmul partial product: bf16 operands, f32 accumulation on the MXU.
    acc_ref[...] += jnp.dot(
        h_ref[...].astype(jnp.bfloat16),
        w_ref[...],
        preferred_element_type=jnp.float32,
    )

    @pl.when(k == pl.num_programs(1) - 1)
    def _():
        # Bias + dropout(identity, eval) + residual + LayerNorm, all in f32.
        # TODO(synk): training-time dropout (hidden_dropout_prob > 0) not implemented.
        y = acc_ref[...] + b_ref[...]
        y = y + x_ref[...].astype(jnp.float32)
        mu = jnp.mean(y, axis=-1, keepdims=True)
        d = y - mu
        var = jnp.mean(d * d, axis=-1, keepdims=True)
        y = d * jax.lax.rsqrt(var + LN_EPS) * g_ref[...] + beta_ref[...]
        o_ref[...] = y.astype(o_ref.dtype)


def _round_up(v, m):
    return ((v + m - 1) // m) * m


def self_output(hidden_states, input_tensor, params):
    """Forward pass of SelfOutput (eval mode).

    hidden_states, input_tensor: (B, L, H) float32
    params["w"]: (H, H) bfloat16 in (in, out) layout (already transposed from
                 PyTorch's (out, in)); "b", "ln_gamma", "ln_beta": (H,) float32
    """
    B, L, H = hidden_states.shape
    M = B * L

    # Collapse batch & sequence into one row axis: one big lane/sublane-dense
    # matmul + store slab instead of B tiny ones.
    h2 = hidden_states.reshape(M, H)
    x2 = input_tensor.reshape(M, H)

    w = params["w"]                      # (H, H), (in, out), bf16
    b = params["b"].reshape(1, H)
    gamma = params["ln_gamma"].reshape(1, H)
    beta = params["ln_beta"].reshape(1, H)

    # Row tile: multiple of 8 sublanes, capped at 256; force >= 2 row tiles
    # whenever possible so the "parallel" axis can be sharded across the two
    # v7x TensorCores and input/output prefetch actually overlaps compute.
    tm = min(256, _round_up(M, 8))
    if M > 8 and pl.cdiv(M, tm) < 2:
        tm = max(8, _round_up((M + 1) // 2, 8))
    row_tiles = pl.cdiv(M, tm)

    # K (input-feature) tiling: only kicks in for very large H, where even a
    # bf16 (H, H) weight block would strain VMEM.
    if H > 2048 and H % 512 == 0:
        tk = 512
    else:
        tk = H
    k_tiles = pl.cdiv(H, tk)
    # TODO(synk): output-column (N) tiling for H >> 8k would additionally need
    # a two-pass LayerNorm (row stats span all N tiles); not implemented.

    row_in_map = lambda i, k: (i, k)     # hidden_states rows x K slice
    row_map = lambda i, k: (i, 0)        # residual / output: full-H row slab
    w_map = lambda i, k: (k, 0)          # weights: K slice x full N
    const_map = lambda i, k: (0, 0)      # bias / gamma / beta

    if k_tiles == 1:
        # Constant block index -> a single VMEM buffer suffices; halves W's
        # VMEM residency vs. the default double buffering.
        w_spec = pl.BlockSpec((tk, H), w_map, pipeline_mode=pl.Buffered(1))
        w_bufs = 1
    else:
        w_spec = pl.BlockSpec((tk, H), w_map)
        w_bufs = 2

    # Working-set-derived scoped-VMEM limit (v7x-safe cap of 64 MiB).
    f32, bf16 = 4, 2
    working_set = (
        2 * tm * tk * f32            # hidden_states tiles (double buffered)
        + 2 * tm * H * f32           # residual tiles
        + 2 * tm * H * f32           # output tiles
        + w_bufs * tk * H * bf16     # weight tile(s)
        + tm * H * f32               # f32 accumulator scratch
        + 8 * H * f32                # bias / gamma / beta
    )
    vmem_limit = int(min(max(2 * working_set, 32 * 1024 * 1024),
                         64 * 1024 * 1024))

    cost = pl.CostEstimate(
        flops=2 * M * H * H + 8 * M * H,
        transcendentals=M,                                     # rsqrt per row
        bytes_accessed=(3 * M * H + 4 * H) * f32 + H * H * bf16,
    )

    out = pl.pallas_call(
        _self_output_kernel,
        out_shape=jax.ShapeDtypeStruct((M, H), hidden_states.dtype),
        grid_spec=pltpu.PrefetchScalarGridSpec(
            num_scalar_prefetch=0,
            grid=(row_tiles, k_tiles),
            in_specs=[
                pl.BlockSpec((tm, tk), row_in_map),   # hidden_states rows
                pl.BlockSpec((tm, H), row_map),       # residual rows
                w_spec,                               # W (in, out), bf16
                pl.BlockSpec((1, H), const_map),      # bias
                pl.BlockSpec((1, H), const_map),      # LN gamma
                pl.BlockSpec((1, H), const_map),      # LN beta
            ],
            out_specs=pl.BlockSpec((tm, H), row_map),
            scratch_shapes=[pltpu.VMEM((tm, H), jnp.float32)],
        ),
        compiler_params=pltpu.CompilerParams(
            dimension_semantics=("parallel", "arbitrary"),
            vmem_limit_bytes=vmem_limit,
        ),
        cost_estimate=cost,
    )(h2, x2, w, b, gamma, beta)

    return out.reshape(B, L, H)


def init_params(key, hidden_size):
    """Weights stored in the kernel's preferred layout: W is (in, out) bf16."""
    ks = jax.random.split(key, 2)
    std = 0.02
    H = hidden_size
    w_pt = std * jax.random.normal(ks[0], (H, H), jnp.float32)  # PyTorch (out, in)
    w_t = w_pt.T                                                 # (in, out)
    return {
        "w": w_t.astype(jnp.bfloat16),   # kernel weight (bf16, once at init)
        "w_f32": w_t,                    # f32 copy, only for the reference check
        "b": std * jax.random.normal(ks[1], (H,), jnp.float32),
        "ln_gamma": jnp.ones((H,), jnp.float32),
        "ln_beta": jnp.zeros((H,), jnp.float32),
    }


def _reference(hidden_states, input_tensor, params):
    """Pure-JAX f32 reference of the PyTorch module (eval mode)."""
    y = jnp.einsum("blh,ho->blo", hidden_states, params["w_f32"]) + params["b"]
    y = y + input_tensor
    mu = jnp.mean(y, axis=-1, keepdims=True)
    var = jnp.mean((y - mu) ** 2, axis=-1, keepdims=True)
    return (y - mu) * jax.lax.rsqrt(var + LN_EPS) * params["ln_gamma"] + params["ln_beta"]


if __name__ == "__main__":
    B, L, H = 2, 8, 32

    key = jax.random.PRNGKey(0)
    k_par, k_h, k_x = jax.random.split(key, 3)

    params = init_params(k_par, H)
    hidden_states = jax.random.normal(k_h, (B, L, H), jnp.float32)
    input_tensor = jax.random.normal(k_x, (B, L, H), jnp.float32)

    out = self_output(hidden_states, input_tensor, params)
    jax.block_until_ready(out)

    ref = _reference(hidden_states, input_tensor, params)
    assert out.shape == (B, L, H)
    # bf16 matmul operands (with f32 accumulation) drift slightly from the
    # all-f32 torch reference; tolerance loosened accordingly.
    assert jnp.allclose(out, ref, rtol=2e-2, atol=2e-2), \
        float(jnp.max(jnp.abs(out - ref)))
    print("KERNEL_OK")
</pallas_src>

<mosaic_0001>
module attributes {stable_mosaic.version = 11 : i64} {
  func.func @_self_output_kernel(%arg0: i32, %arg1: i32, %arg2: memref<8x32xf32, #tpu.memory_space<vmem>>, %arg3: memref<8x32xf32, #tpu.memory_space<vmem>>, %arg4: memref<32x32xbf16, #tpu.memory_space<vmem>>, %arg5: memref<1x32xf32, #tpu.memory_space<vmem>>, %arg6: memref<1x32xf32, #tpu.memory_space<vmem>>, %arg7: memref<1x32xf32, #tpu.memory_space<vmem>>, %arg8: memref<8x32xf32, #tpu.memory_space<vmem>>, %arg9: memref<8x32xf32, #tpu.memory_space<vmem>>) attributes {dimension_semantics = [#tpu.dimension_semantics<parallel>, #tpu.dimension_semantics<arbitrary>], iteration_bounds = array<i64: 2, 1>, scalar_prefetch = 0 : i64, scratch_operands = 1 : i64, tpu.core_type = #tpu.core_type<tc>, window_params = [{transform_indices = @transform_0, window_bounds = array<i64: 8, 32>}, {transform_indices = @transform_1, window_bounds = array<i64: 8, 32>}, {pipeline_mode = #tpu.pipeline_mode<synchronous>, transform_indices = @transform_2, window_bounds = array<i64: 32, 32>}, {pipeline_mode = #tpu.pipeline_mode<synchronous>, transform_indices = @transform_3, window_bounds = array<i64: 1, 32>}, {pipeline_mode = #tpu.pipeline_mode<synchronous>, transform_indices = @transform_4, window_bounds = array<i64: 1, 32>}, {pipeline_mode = #tpu.pipeline_mode<synchronous>, transform_indices = @transform_5, window_bounds = array<i64: 1, 32>}, {transform_indices = @transform_6, window_bounds = array<i64: 8, 32>}]} {
    %c0_i32 = arith.constant 0 : i32
    %0 = arith.cmpi eq, %arg1, %c0_i32 : i32
    %1 = arith.extui %0 : i1 to i32
    %c0_i32_0 = arith.constant 0 : i32
    %2 = arith.cmpi ne, %1, %c0_i32_0 : i32
    scf.if %2 {
      %cst_10 = arith.constant 0.000000e+00 : f32
      %13 = vector.broadcast %cst_10 : f32 to vector<8x32xf32>
      %c0_11 = arith.constant 0 : index
      %c0_12 = arith.constant 0 : index
      %14 = vector.load %arg9[%c0_11, %c0_12] : memref<8x32xf32, #tpu.memory_space<vmem>>, vector<8x32xf32>
      tpu.vector_store %arg9[%c0_11, %c0_12], %13 {strides = array<i32>} : memref<8x32xf32, #tpu.memory_space<vmem>>, vector<8x32xf32>,
    } else {
    }
    %c0 = arith.constant 0 : index
    %c0_1 = arith.constant 0 : index
    %3 = vector.load %arg9[%c0, %c0_1] : memref<8x32xf32, #tpu.memory_space<vmem>>, vector<8x32xf32>
    %c0_2 = arith.constant 0 : index
    %c0_3 = arith.constant 0 : index
    %4 = vector.load %arg2[%c0_2, %c0_3] : memref<8x32xf32, #tpu.memory_space<vmem>>, vector<8x32xf32>
    %5 = arith.truncf %4 : vector<8x32xf32> to vector<8x32xbf16>
    %c0_4 = arith.constant 0 : index
    %c0_5 = arith.constant 0 : index
    %6 = vector.load %arg4[%c0_4, %c0_5] : memref<32x32xbf16, #tpu.memory_space<vmem>>, vector<32x32xbf16>
    %cst = arith.constant dense<0.000000e+00> : vector<8x32xf32>
    %7 = tpu.matmul %5, %6, %cst {dimension_numbers = #tpu.dot_dimension_numbers<[1], [0], [0], [1], [0, 0, 1, 1], [], []>} : vector<8x32xbf16>, vector<32x32xbf16>, vector<8x32xf32> -> vector<8x32xf32>
    %8 = arith.addf %3, %7 : vector<8x32xf32>
    %c0_6 = arith.constant 0 : index
    %c0_7 = arith.constant 0 : index
    %9 = vector.load %arg9[%c0_6, %c0_7] : memref<8x32xf32, #tpu.memory_space<vmem>>, vector<8x32xf32>
    tpu.vector_store %arg9[%c0_6, %c0_7], %8 {strides = array<i32>} : memref<8x32xf32, #tpu.memory_space<vmem>>, vector<8x32xf32>,
    %c0_i32_8 = arith.constant 0 : i32
    %10 = arith.cmpi eq, %arg1, %c0_i32_8 : i32
    %11 = arith.extui %10 : i1 to i32
    %c0_i32_9 = arith.constant 0 : i32
    %12 = arith.cmpi ne, %11, %c0_i32_9 : i32
    scf.if %12 {
      %c0_10 = arith.constant 0 : index
      %c0_11 = arith.constant 0 : index
      %13 = vector.load %arg9[%c0_10, %c0_11] : memref<8x32xf32, #tpu.memory_space<vmem>>, vector<8x32xf32>
      %c0_12 = arith.constant 0 : index
      %c0_13 = arith.constant 0 : index
      %14 = vector.load %arg5[%c0_12, %c0_13] : memref<1x32xf32, #tpu.memory_space<vmem>>, vector<1x32xf32>
      %15 = vector.broadcast %14 : vector<1x32xf32> to vector<8x32xf32>
      %16 = arith.addf %13, %15 : vector<8x32xf32>
      %c0_14 = arith.constant 0 : index
      %c0_15 = arith.constant 0 : index
      %17 = vector.load %arg3[%c0_14, %c0_15] : memref<8x32xf32, #tpu.memory_space<vmem>>, vector<8x32xf32>
      %18 = arith.addf %16, %17 : vector<8x32xf32>
      %cst_16 = arith.constant dense<0.000000e+00> : vector<8xf32>
      %19 = vector.multi_reduction <add>, %18, %cst_16 [1] : vector<8x32xf32> to vector<8xf32>
      %20 = vector.shape_cast %19 : vector<8xf32> to vector<8x1xf32>
      %cst_17 = arith.constant 3.200000e+01 : f32
      %21 = vector.broadcast %cst_17 : f32 to vector<8x1xf32>
      %22 = arith.divf %20, %21 : vector<8x1xf32>
      %23 = vector.broadcast %22 : vector<8x1xf32> to vector<8x32xf32>
      %24 = arith.subf %18, %23 : vector<8x32xf32>
      %25 = arith.mulf %24, %24 : vector<8x32xf32>
      %cst_18 = arith.constant dense<0.000000e+00> : vector<8xf32>
      %26 = vector.multi_reduction <add>, %25, %cst_18 [1] : vector<8x32xf32> to vector<8xf32>
      %27 = vector.shape_cast %26 : vector<8xf32> to vector<8x1xf32>
      %cst_19 = arith.constant 3.200000e+01 : f32
      %28 = vector.broadcast %cst_19 : f32 to vector<8x1xf32>
      %29 = arith.divf %27, %28 : vector<8x1xf32>
      %cst_20 = arith.constant 9.99999974E-6 : f32
      %30 = vector.broadcast %cst_20 : f32 to vector<8x1xf32>
      %31 = arith.addf %29, %30 : vector<8x1xf32>
      %32 = math.rsqrt %31 : vector<8x1xf32>
      %33 = vector.broadcast %32 : vector<8x1xf32> to vector<8x32xf32>
      %34 = arith.mulf %24, %33 : vector<8x32xf32>
      %c0_21 = arith.constant 0 : index
      %c0_22 = arith.constant 0 : index
      %35 = vector.load %arg6[%c0_21, %c0_22] : memref<1x32xf32, #tpu.memory_space<vmem>>, vector<1x32xf32>
      %36 = vector.broadcast %35 : vector<1x32xf32> to vector<8x32xf32>
      %37 = arith.mulf %34, %36 : vector<8x32xf32>
      %c0_23 = arith.constant 0 : index
      %c0_24 = arith.constant 0 : index
      %38 = vector.load %arg7[%c0_23, %c0_24] : memref<1x32xf32, #tpu.memory_space<vmem>>, vector<1x32xf32>
      %39 = vector.broadcast %38 : vector<1x32xf32> to vector<8x32xf32>
      %40 = arith.addf %37, %39 : vector<8x32xf32>
      %c0_25 = arith.constant 0 : index
      %c0_26 = arith.constant 0 : index
      %41 = vector.load %arg8[%c0_25, %c0_26] : memref<8x32xf32, #tpu.memory_space<vmem>>, vector<8x32xf32>
      tpu.vector_store %arg8[%c0_25, %c0_26], %40 {strides = array<i32>} : memref<8x32xf32, #tpu.memory_space<vmem>>, vector<8x32xf32>,
    } else {
    }
    return
  }
  func.func @transform_0(%arg0: i32, %arg1: i32) -> (i32, i32) {
    %c0_i32 = arith.constant 0 : i32
    return %arg0, %arg1 : i32, i32
  }
  func.func @transform_1(%arg0: i32, %arg1: i32) -> (i32, i32) {
    %c0_i32 = arith.constant 0 : i32
    %c0_i32_0 = arith.constant 0 : i32
    return %arg0, %c0_i32 : i32, i32
  }
  func.func @transform_2(%arg0: i32, %arg1: i32) -> (i32, i32) {
    %c0_i32 = arith.constant 0 : i32
    %c0_i32_0 = arith.constant 0 : i32
    return %arg1, %c0_i32 : i32, i32
  }
  func.func @transform_3(%arg0: i32, %arg1: i32) -> (i32, i32) {
    %c0_i32 = arith.constant 0 : i32
    %c0_i32_0 = arith.constant 0 : i32
    %c0_i32_1 = arith.constant 0 : i32
    return %c0_i32, %c0_i32_0 : i32, i32
  }
  func.func @transform_4(%arg0: i32, %arg1: i32) -> (i32, i32) {
    %c0_i32 = arith.constant 0 : i32
    %c0_i32_0 = arith.constant 0 : i32
    %c0_i32_1 = arith.constant 0 : i32
    return %c0_i32, %c0_i32_0 : i32, i32
  }
  func.func @transform_5(%arg0: i32, %arg1: i32) -> (i32, i32) {
    %c0_i32 = arith.constant 0 : i32
    %c0_i32_0 = arith.constant 0 : i32
    %c0_i32_1 = arith.constant 0 : i32
    return %c0_i32, %c0_i32_0 : i32, i32
  }
  func.func @transform_6(%arg0: i32, %arg1: i32) -> (i32, i32) {
    %c0_i32 = arith.constant 0 : i32
    %c0_i32_0 = arith.constant 0 : i32
    return %arg0, %c0_i32 : i32, i32
  }
}

</mosaic_0001>

<bundles_post_ra>
// kernel: tpu_custom_call.1
= control target key start
LH: loop header
LB: loop body
LE: loop exit
PB: predicated region body
PF: predicated region fallthrough
CT: control target
= control target key end

     0   :  { %s1196_s0 = inlined_call_operand.hbm [shape: f32[16,32], index: 0, kind: input, shape index: {}]   ;;  %s1197_s1 = inlined_call_operand.hbm [shape: f32[16,32], index: 1, kind: input, shape index: {}]   ;;  %s1198_s2 = inlined_call_operand.hbm [shape: bf16[32,32], index: 2, kind: input, shape index: {}]   ;;  %s1199_s3 = inlined_call_operand.vmem [shape: f32[1,32], index: 3, kind: input, shape index: {}]   ;;  %s1200_s4 = inlined_call_operand.vmem [shape: f32[1,32], index: 4, kind: input, shape index: {}]   ;;  %s1201_s5 = inlined_call_operand.vmem [shape: f32[1,32], index: 5, kind: input, shape index: {}]   ;;  %s1202_s6 = inlined_call_operand.hbm [shape: f32[16,32], index: 6, kind: output, shape index: {}]  }
   0x1   :  { %1210 = sst [smem:[#allocation18_spill]] %s1198_s2 }
   0x2   :  { %11 = vsyncpa [#allocation4], 0 }
   0x3   :  { %13 = vsyncpa [#allocation4 + $0x1], 0 }
   0x4   :  { %14 = vsyncpa [#allocation7], 0 }
   0x5   :  { %16 = vsyncpa [#allocation7 + $0x1], 0 }
   0x6   :  { %17 = vsyncpa [#allocation5], 0 }
   0x7   :  { %19 = vsyncpa [#allocation5 + $0x1], 0  ;;  %s930_s21 = smov 0   ;;  %s932_s22 = smov 0  }
   0x8   :  { %s934_s23 = smov 0   ;;  %s936_s24 = smov 0  }
   0x9   :  { %s938_s25 = smov 0   ;;  %s940_s26 = smov 0  }
   0xa LB: > { %1211 = sst [smem:[#allocation14_spill]] %s873_s23  ;;  %s961_s27 = sadd.s32 4294967295, %s885_s26   ;;  %s885_s26 = sphi %s940_s26, %s25_s26   ;;  %s881_s25 = sphi %s938_s25, %s1234_s25   ;;  %s877_s24 = sphi %s936_s24, %s1233_s24   ;;  %s873_s23 = sphi %s934_s23, %s1232_s23   ;;  %s869_s22 = sphi %s932_s22, %s1236_s22   ;;  %s865_s21 = sphi %s930_s21, %s1235_s21  }
   0xb   : > { %1212 = sst [smem:[#allocation15_spill]] %s881_s25  ;;  %s587_s28 = sadd.s32 4294967294, %s885_s26  }
   0xc   : > { %p59_p0 = scmp.ne.s32.totalorder %s869_s22, %s865_s21  ;;  %p1203_p1 = scmp.eq.s32.totalorder %s961_s27, 0 }
   0xd   : > { %p204_p3 = scmp.eq.s32.totalorder %s587_s28, 1  ;;  %p588_p5 = scmp.ge.s32.totalorder %s885_s26, 1 }
   0xe   : > { %p970_p4 = por %p1203_p1, %p59_p0  ;;  %p211_p7 = scmp.lt.s32.totalorder %s885_s26, 3 }
   0xf   : > { %p975_p6 = por %p204_p3, %p59_p0  ;;  %s887_s8 = smov [#allocation8]  }
  0x10   : > { %s1213_s29 = scalar_select %p970_p4, 1, 0 }
  0x11   : > { %s1214_s30 = scalar_select %p975_p6, 1, 0 }
  0x12   : > { %p980_p8 = pnand %p588_p5, %p211_p7  ;;  %s226_s9 = sshll.u32 %s887_s8, 4  ;;  %s227_s9 = int_to_ptr.vmem [resolvable:$true] %s226_s9 }
  0x13   : > { %s37_s11 = sadd.s32 1, %s881_s25  ;;  %s1217_s2 = sld [smem:[#allocation18_spill]] }
  0x14   : > { %s1215_s7 = scalar_select %p980_p8, 1, 0 }
  0x15   : > { %p631_p9 = pneg %p980_p8 }
  0x17   : > { %p989_p11 = pnand %p631_p9, %p1203_p1 }
  0x19   : > { %s707_s14 = scalar_lea.hbm %s1217_s2, 256  ;;  %p709_p13 = pneg %p989_p11 }
  0x1a   : > { %p708_p12 = scmp.ne.s32.totalorder %s1217_s2, %s707_s14  ;;  %p714_p5 = scmp.lt.u32.totalorder %s707_s14, %s1217_s2 }
  0x1c   : > { %p710_p0 = pnand %p709_p13, %p708_p12 }
  0x1e   : > { %p711_p3 = pneg %p710_p0 }
  0x20   : > { %p716_p7 = pnand %p714_p5, %p711_p3 }
  0x22   : > { %719 = shalt.err (!%p716_p7)
}
  0x23   : > { %s720_s19 = scalar_lea.vmem %s227_s9, 256  ;;  %p728_p2 = scmp.lt.s32.totalorder %s227_s9, %s227_s9 }
  0x24   : > { %p721_p9 = scmp.ne.s32.totalorder %s227_s9, %s720_s19  ;;  %p729_p6 = scmp.lt.s32.totalorder %s720_s19, %s720_s19 }
  0x26   : > { %p723_p10 = pnand %p721_p9, %p709_p13  ;;  %p730_p4 = por %p729_p6, %p728_p2 }
  0x28   : > { %p724_p1 = pneg %p723_p10 }
  0x2a   : > { %p731_p8 = pnand %p730_p4, %p724_p1 }
  0x2c   : > { %734 = shalt.err (!%p731_p8)
}
  0x2d   : > { %s888_s20 = smov 64   ;;  %s889_s28 = smov 4  }
  0x2e   : > { %634 = dma.hbm_to_vmem [thread:$0]  (!%p989_p11), %s1217_s2, 256, %s227_s9, [#allocation7], %s888_s20, %s888_s20, %s889_s28  }
  0x2f   : > { %p39_p1 = scmp.ge.s32.totalorder %s37_s11, 2  ;;  %s46_s13 = sadd.s32 1, %s873_s23 }
  0x30   : > { %p53_p2 = scmp.ne.s32.totalorder %s873_s23, %s869_s22  ;;  %p54_p4 = scmp.eq.s32.totalorder %s885_s26, 0 }
  0x31   : > { %s1238_s11 = smov (%p39_p1, %s37_s11), 0  ;;  %p1220_p8 = scmp.eq.s32.totalorder %s961_s27, 1 }
  0x32   : > { %1218 = sst [smem:[#allocation16_spill]] %s1238_s11  ;;  %p1016_p6 = por %p54_p4, %p53_p2 }
  0x33   : > { %p1022_p10 = por %p1220_p8, %p53_p2  ;;  %s41_s15 = ssub.s32 %s881_s25, %s1238_s11 }
  0x34   : > { %p647_p11 = scmp.lt.s32.totalorder %s885_s26, 2  ;;  %p44_p12 = scmp.eq.s32.totalorder %s41_s15, 0 }
  0x35   : > { %s1221_s10 = scalar_select %p1022_p10, 1, 0 }
  0x36   : > { %s249_s9 = sand.u32 1, %s873_s23   ;;  %s592_s18 = sshll.u32 %s881_s25, 7 }
  0x37   : > { %s1030_s16 = sshll.u32 %s249_s9, 3  ;;  %s1039_s28 = scalar_lea.hbm %s1196_s0, %s592_s18 }
  0x38   : > { %s1033_s17 = scalar_select %p44_p12, %s873_s23, %s46_s13  }
  0x39   : > { %s253_s8 = scalar_lea.vmem [#allocation3], %s1030_s16  ;;  %p1046_p13 = pnand %p647_p11, %p1016_p6 }
  0x3a   : > { %1222 = sst [smem:[#allocation17_spill]] %s1033_s17  ;;  %s261_s12 = sshll.u32 %s253_s8, 4  ;;  %s1042_s12 = int_to_ptr.vmem [resolvable:$true] %s261_s12 }
  0x3b   : > { %s1053_s19 = scalar_lea.hbm %s1197_s1, %s592_s18  ;;  %s268_s20 = sand.u32 1, %s885_s26  }
  0x3c   : > { %s250_s11 = scalar_lea.sflag [#allocation4], %s249_s9  ;;  %s735_s25 = scalar_lea.hbm %s1039_s28, 128 }
  0x3d   : > { %p736_p0 = scmp.ne.s32.totalorder %s1039_s28, %s735_s25  ;;  %p737_p3 = pneg %p1046_p13 }
  0x3e   : > { %s740_s17 = scalar_lea.hbm %s1196_s0, 256  ;;  %p741_p9 = scmp.lt.u32.totalorder %s1039_s28, %s1196_s0 }
  0x3f   : > { %p738_p5 = pnand %p737_p3, %p736_p0  ;;  %p742_p1 = scmp.lt.u32.totalorder %s740_s17, %s735_s25 }
  0x40   : > { %p744_p4 = scmp.lt.u32.totalorder %s735_s25, %s1039_s28 }
  0x41   : > { %p739_p7 = pneg %p738_p5  ;;  %p743_p2 = por %p742_p1, %p741_p9 }
  0x43   : > { %p745_p6 = por %p744_p4, %p743_p2 }
  0x45   : > { %p746_p8 = pnand %p745_p6, %p739_p7 }
  0x47   : > { %749 = shalt.err (!%p746_p8)
}
  0x48   : > { %s750_s9 = scalar_lea.vmem %s1042_s12, 128  ;;  %s890_s18 = smov [#allocation3]  }
  0x49   : > { %p751_p11 = scmp.ne.s32.totalorder %s1042_s12, %s750_s9  ;;  %s755_s13 = sshll.u32 %s890_s18, 4  ;;  %s756_s13 = int_to_ptr.vmem [resolvable:$false] %s755_s13 }
  0x4a   : > { %s757_s23 = scalar_lea.vmem %s756_s13, 256  ;;  %p758_p5 = scmp.lt.s32.totalorder %s1042_s12, %s756_s13 }
  0x4b   : > { %p753_p12 = pnand %p751_p11, %p737_p3  ;;  %p759_p9 = scmp.lt.s32.totalorder %s757_s23, %s750_s9 }
  0x4d   : > { %p754_p0 = pneg %p753_p12  ;;  %p760_p1 = por %p759_p9, %p758_p5 }
  0x4f   : > { %p761_p2 = pnand %p760_p1, %p754_p0 }
  0x51   : > { %764 = shalt.err (!%p761_p2)
}
  0x52   : > { %638 = dma.hbm_to_vmem [thread:$0]  (!%p1046_p13), %s1039_s28, 128, %s1042_s12, %s250_s11  }
  0x53   : > { %s272_s25 = scalar_lea.vmem [#allocation6], %s1030_s16  ;;  %s269_s14 = scalar_lea.sflag [#allocation7], %s268_s20 }
  0x54   : > { %s279_s17 = sshll.u32 %s272_s25, 4  ;;  %s765_s8 = scalar_lea.hbm %s1053_s19, 128  ;;  %s280_s17 = int_to_ptr.vmem [resolvable:$true] %s279_s17 }
  0x55   : > { %p766_p7 = scmp.ne.s32.totalorder %s1053_s19, %s765_s8  ;;  %s770_s18 = scalar_lea.hbm %s1197_s1, 256 }
  0x56   : > { %p771_p8 = scmp.lt.u32.totalorder %s1053_s19, %s1197_s1  ;;  %p772_p11 = scmp.lt.u32.totalorder %s770_s18, %s765_s8 }
  0x57   : > { %p768_p4 = pnand %p766_p7, %p737_p3  ;;  %p774_p0 = scmp.lt.u32.totalorder %s765_s8, %s1053_s19 }
  0x58   : > { %p773_p12 = por %p772_p11, %p771_p8 }
  0x59   : > { %p769_p6 = pneg %p768_p4 }
  0x5a   : > { %p775_p5 = por %p774_p0, %p773_p12 }
  0x5c   : > { %p776_p9 = pnand %p775_p5, %p769_p6 }
  0x5e   : > { %779 = shalt.err (!%p776_p9)
}
  0x5f   : > { %s780_s11 = scalar_lea.vmem %s280_s17, 128  ;;  %s891_s16 = smov [#allocation6]  }
  0x60   : > { %p781_p1 = scmp.ne.s32.totalorder %s280_s17, %s780_s11  ;;  %s785_s28 = sshll.u32 %s891_s16, 4  ;;  %s786_s28 = int_to_ptr.vmem [resolvable:$false] %s785_s28 }
  0x61   : > { %s787_s12 = scalar_lea.vmem %s786_s28, 256  ;;  %p788_p4 = scmp.lt.s32.totalorder %s280_s17, %s786_s28 }
  0x62   : > { %p783_p2 = pnand %p781_p1, %p737_p3  ;;  %p789_p10 = scmp.lt.s32.totalorder %s787_s12, %s780_s11 }
  0x64   : > { %p784_p7 = pneg %p783_p2  ;;  %p790_p8 = por %p789_p10, %p788_p4 }
  0x66   : > { %p791_p11 = pnand %p790_p8, %p784_p7 }
  0x68   : > { %794 = shalt.err (!%p791_p11)
}
  0x69   : > { %641 = dma.hbm_to_vmem [thread:$0]  (!%p1046_p13), %s1053_s19, 128, %s280_s17, %s269_s14  }
  0x6a   : > { %p1224_p6 = scmp.ne.s32.totalorder %s1215_s7, 0 }
  0x6b   : > { %s1106_s20 = sand.u32 (!%p1224_p6), 1, %s869_s22   ;;  %p1225_p10 = scmp.ne.s32.totalorder (!%p1224_p6), %s1213_s29, 0 }
  0x6c   : > { %288 = sbr.rel (%p1224_p6) target bundleno = 684 (0x2ac), region = 44  ;;  %s1109_s25 = sshll.u32 (!%p1224_p6), %s1106_s20, 3 }
  0x6d   : > { %s291_s8 = scalar_lea.sflag (!%p1224_p6), [#allocation4], %s1106_s20  ;;  %s294_s2 = scalar_lea.vmem (!%p1224_p6), [#allocation3], %s1109_s25 }
  0x73   : > { %848 = dma.done.wait (%p1225_p10), %s291_s8, 128  }
  0x74   : > { %850 = vsyncadd (%p1225_p10), %s291_s8, 4294967168  ;;  %s299_s7 = sand.u32 1, %s961_s27   ;;  %s303_s19 = scalar_lea.vmem [#allocation6], %s1109_s25 }
  0x75   : > { %s300_s15 = scalar_lea.sflag [#allocation7], %s299_s7 }
  0x76   : > { %852 = dma.done.wait (%p1225_p10), %s300_s15, 128  }
  0x77   : > { %854 = vsyncadd (%p1225_p10), %s300_s15, 4294967168  ;;  %p1226_p13 = scmp.eq.s32.totalorder %s961_s27, 0 }
  0x79   : > { %856 = dma.done.wait (%p1226_p13), [#allocation7], 256   ;;  %p1227_p3 = pmov %p1226_p13 }
  0x7a   : > { %vm347_vm0 = vcmask 261120   ;;  %v892_v0 = vmov 0.0   ;;  %vm893_vm1 = vmmov 0   ;;  %v703_v1 = vld [vmem:[#allocation8] sm:$0xff]   ;;  %v704_v2 = vld [vmem:[#allocation8 + $0x8] sm:$0xff]   ;;  %v426_v13 = vld [vmem:[%s303_s19] sm:$0xff] }
  0x7b   : > { %858 = vsyncadd (%p1227_p3), [#allocation7], 4294967040  ;;  %348 = vst.msk [vmem:[#allocation2] sm:$0xff] %vm347_vm0, %v892_v0  ;;  %613 = vmatprep.subr.bf16.mxu0 %v892_v0  ;;  %617 = vmatprep.mubr.msk.bf16.mxu0 %vm893_vm1, %v892_v0  ;;  %v350_v3 = vld [vmem:[%s294_s2] sm:$0xff]  ;;  %v603_v11 = vld [vmem:[%s1199_s3] ss:$0 sm:$0xff] }
  0x7c   : > { %614 = vmatpush3.bf16.msra.mxu0 %v703_v1  ;;  %v351_v4 = vpack.c.bf16 %v350_v3, %v350_v3  ;;  %v604_v26 = vld [vmem:[%s1200_s4] ss:$0 sm:$0xff]  ;;  %s607_s13 = sshll.u32 %s877_s24, 7  ;;  %s340_s23 = scalar_lea.vmem [#allocation9], %s1109_s25 }
  0x7d   : > { %615 = vmatprep.subr.bf16.mxu0 %v892_v0  ;;  %v605_v28 = vld [vmem:[%s1201_s5] ss:$0 sm:$0xff]  ;;  %s473_s11 = sshll.u32 %s340_s23, 4  ;;  %s1146_s12 = scalar_lea.hbm %s1202_s6, %s607_s13  ;;  %s1148_s11 = int_to_ptr.vmem [resolvable:$true] %s473_s11 }
  0x7e   : > { %s460_s8 = scalar_lea.sflag [#allocation5], %s1106_s20  ;;  %s795_s2 = scalar_lea.vmem %s1148_s11, 128 }
  0x7f   : > { %p796_p12 = scmp.ne.s32.totalorder %s1148_s11, %s795_s2  ;;  %p1228_p0 = scmp.ne.s32.totalorder %s1221_s10, 0 }
  0x80   : > { %616 = vmatpush3.bf16.msra.mxu0 %v704_v2  ;;  %s894_s24 = smov [#allocation9]  }
  0x81   : > { %p797_p5 = pnand %p796_p12, %p1228_p0  ;;  %s799_s25 = sshll.u32 %s894_s24, 4  ;;  %s800_s25 = int_to_ptr.vmem [resolvable:$false] %s799_s25 }
  0x82   : > { %v349_v5 = vld [vmem:[#allocation2] sm:$0xff]  ;;  %s801_s7 = scalar_lea.vmem %s800_s25, 256  ;;  %p802_p1 = scmp.lt.s32.totalorder %s1148_s11, %s800_s25 }
  0x83   : > { %618 = vmatmul.mubr.msk.bf16.vlgmr.msra.gmra.mrb[0].mxu0 %vm347_vm0, %v351_v4  ;;  %p798_p9 = pneg %p797_p5  ;;  %p803_p2 = scmp.lt.s32.totalorder %s801_s7, %s795_s2 }
  0x85   : > { %p804_p7 = por %p803_p2, %p802_p1 }
  0x87   : > { %p805_p4 = pnand %p804_p7, %p798_p9 }
 0x156   : > { %v406_v6 = vpop.f32.mrb[0].mxu0 }
 0x157   : > { %v412_v7 = vadd.f32 %v406_v6, %v349_v5  ;;  %v619_v8 = vpop.f32.mrb[1].mxu0 }
 0x158   : > { %v409_v9 = vpop.f32.mrb[2].mxu0 }
 0x159   : > { %413 = vst.msk [vmem:[#allocation2] sm:$0xff] %vm347_vm0, %v412_v7  ;;  %v620_v10 = vpop.f32.mrb[3].mxu0 }
 0x160   : > { %v417_v12 = vld [vmem:[#allocation2] sm:$0xff] }
 0x161   : > { %v425_v14 = vadd.f32 %v603_v11, %v417_v12 }
 0x163   : > { %v427_v15 = vadd.f32 %v426_v13, %v425_v14 }
 0x165   : > { %v428_v16 = vsel %vm347_vm0, %v427_v15, 0.0 }
 0x166   : > { %429 = vadd.xlane.f32.xlu0 %v428_v16 }
 0x1f3   : > { %v430_v17 = vpop.xlane.xlu0 %429 }
 0x1f4   : > { %v432_v18 = vmul.f32 0.03125, %v430_v17 }
 0x1f6   : > { %v433_v19 = vsub.f32 %v427_v15, %v432_v18 }
 0x1f8   : > { %v434_v20 = vmul.f32 %v433_v19, %v433_v19 }
 0x1fa   : > { %v435_v21 = vsel %vm347_vm0, %v434_v20, 0.0 }
 0x1fb   : > { %436 = vadd.xlane.f32.xlu0 %v435_v21 }
 0x288   : > { %v437_v22 = vpop.xlane.xlu0 %436 }
 0x289   : > { %v438_v23 = vmul.f32 0.03125, %v437_v22 }
 0x28b   : > { %v439_v24 = vadd.f32 1e-05, %v438_v23 }
 0x28d   : > { %705 = vrsqrt.f32 %v439_v24 }
 0x297   : > { %v706_v25 = vpop.eup %705 }
 0x298   : > { %v441_v27 = vmul.f32 %v706_v25, %v433_v19 }
 0x29a   : > { %v449_v29 = vmul.f32 %v604_v26, %v441_v27 }
 0x29c   : > { %v457_v30 = vadd.f32 %v605_v28, %v449_v29 }
 0x29e   : > { %458 = vst.msk [vmem:[%s340_s23] sm:$0xff] %vm347_vm0, %v457_v30 }
 0x29f   : > { %808 = shalt.err (!%p805_p4)
}
 0x2a0   : > { %s809_s20 = scalar_lea.hbm %s1146_s12, 128  ;;  %s813_s27 = scalar_lea.hbm %s1202_s6, 256 }
 0x2a1   : > { %p810_p8 = scmp.ne.s32.totalorder %s1146_s12, %s809_s20  ;;  %p814_p10 = scmp.lt.u32.totalorder %s1146_s12, %s1202_s6 }
 0x2a2   : > { %p815_p13 = scmp.lt.u32.totalorder %s813_s27, %s809_s20  ;;  %p817_p12 = scmp.lt.u32.totalorder %s809_s20, %s1146_s12 }
 0x2a3   : > { %p811_p11 = pnand %p810_p8, %p1228_p0 }
 0x2a4   : > { %p816_p3 = por %p815_p13, %p814_p10 }
 0x2a5   : > { %p812_p6 = pneg %p811_p11 }
 0x2a6   : > { %p818_p5 = por %p817_p12, %p816_p3 }
 0x2a8   : > { %p819_p9 = pnand %p818_p5, %p812_p6 }
 0x2aa   : > { %822 = shalt.err (!%p819_p9)
}
 0x2ab   : > { %629 = dma.vmem_to_hbm [thread:$0]  (%p1228_p0), %s1148_s11, 128, %s1146_s12, %s460_s8  }
 0x2ac PF: > { %s485_s14 = sand.u32 1, %s865_s21   ;;  %p1229_p1 = scmp.ne.s32.totalorder %s1214_s30, 0 }
 0x2ad   : > { %p1230_p2 = scmp.ge.s32.totalorder %s885_s26, 2  ;;  %s486_s9 = scalar_lea.sflag [#allocation5], %s485_s14 }
 0x2af   : > { %p643_p7 = pnand %p1230_p2, %p1229_p1 }
 0x2b1   : > { %860 = dma.done.wait (!%p643_p7), %s486_s9, 128  }
 0x2b2   : > { %862 = vsyncadd (!%p643_p7), %s486_s9, 4294967168  ;;  %s25_s26 = sadd.s32 1, %s885_s26   ;;  %s1231_s18 = sld [smem:[#allocation14_spill]] }
 0x2b3   : > { %p22_p4 = scmp.ge.s32.totalorder %s25_s26, 4   ;;  %s1232_s23 = sld [smem:[#allocation17_spill]] }
 0x2b4   : > { %s1233_s24 = sld [smem:[#allocation15_spill]]  ;;  %s1234_s25 = sld [smem:[#allocation16_spill]] }
 0x2b5   : > { %s1235_s21 = smov %s869_s22  ;;  %24 = sbr.rel (!%p22_p4) target bundleno = 10 (0xa), region = 115 }
 0x2b8   : > { %s1236_s22 = smov %s1231_s18 }
 0x2bc   :  { %491 = vsyncpa [#allocation4], 1 }
 0x2bd   :  { %493 = vsyncpa [#allocation4 + $0x1], 1 }
 0x2be   :  { %494 = vsyncpa [#allocation7], 1 }
 0x2bf   :  { %496 = vsyncpa [#allocation7 + $0x1], 1 }
 0x2c0   :  { %497 = vsyncpa [#allocation5], 1 }
 0x2c1   :  { %499 = vsyncpa [#allocation5 + $0x1], 1 }

</bundles_post_ra>
